<compile_context>
chip_gen: v7x
topology: tpu7x:2x2x1
jax: 0.10.0
libtpu: 0.0.40
codegen_flags: <defaults>
</compile_context>

<pallas_src>
import functools
import math

import jax
import jax.numpy as jnp
from jax.experimental import pallas as pl
from jax.experimental.pallas import tpu as pltpu


# ----------------------------- fused Pallas kernel ------------------------- #

def _fused_mha_kernel(x_ref, wqkv_ref, bqkv_ref, wout_ref, bout_ref, o_ref,
                      qkv_scr, ctx_scr, *, heads, head_d):
    # x_ref:    (1, S, E) f32
    # wqkv_ref: (E, 3E)   bf16   de-interleaved [Q|K|V], 1/sqrt(Dh) folded into Q
    # bqkv_ref: (1, 3E)   f32    (same layout / scaling)
    # wout_ref: (E, E)    bf16   bout_ref: (1, E) f32
    # o_ref:    (1, S, E) f32
    # qkv_scr:  (S, 3E)   bf16 scratch   ctx_scr: (S, E) bf16 scratch
    x = x_ref[0].astype(jnp.bfloat16)                       # (S, E)
    S = x.shape[0]
    E = heads * head_d

    # --- fused QKV projection: bf16 MXU operands, f32 accumulation ----------
    qkv = jnp.dot(x, wqkv_ref[...], preferred_element_type=jnp.float32)
    qkv = qkv + bqkv_ref[...]                               # (S, 3E) f32
    qkv_scr[...] = qkv.astype(jnp.bfloat16)                 # flush (bounds live range)

    # Additive causal bias, hoisted out of the head loop (no -inf: tiling-safe).
    row = jax.lax.broadcasted_iota(jnp.int32, (S, S), 0)
    col = jax.lax.broadcasted_iota(jnp.int32, (S, S), 1)
    mask_bias = jnp.where(col <= row, 0.0, -1e30).astype(jnp.float32)

    # --- per-head causal attention ------------------------------------------
    # heads is static; each iteration ends with a store into ctx_scr so no
    # per-head value survives across iterations.
    for h in range(heads):
        lo = h * head_d
        hi = lo + head_d
        q = qkv_scr[:, lo:hi]                               # (S, Dh) bf16 (scale pre-folded)
        k = qkv_scr[:, E + lo:E + hi]                       # (S, Dh) bf16
        v = qkv_scr[:, 2 * E + lo:2 * E + hi]               # (S, Dh) bf16

        # Contract the Dh axes directly -- MXU consumes k untransposed.
        s = jax.lax.dot_general(q, k, (((1,), (1,)), ((), ())),
                                preferred_element_type=jnp.float32)  # (S, S) f32
        s = s + mask_bias

        # softmax in f32; 1/denom folded AFTER attn@v (only (S, Dh) multiply).
        m = jnp.max(s, axis=-1, keepdims=True)
        p = jnp.exp(s - m)
        denom = jnp.sum(p, axis=-1, keepdims=True)

        ctx = jnp.dot(p.astype(jnp.bfloat16), v,
                      preferred_element_type=jnp.float32)   # (S, Dh) f32
        ctx = ctx * pl.reciprocal(denom, approx=True)
        ctx_scr[:, lo:hi] = ctx.astype(jnp.bfloat16)        # head-major concat, in place

    # --- output projection: single K=E matmul from the scratch slab ---------
    out = jnp.dot(ctx_scr[...], wout_ref[...],
                  preferred_element_type=jnp.float32) + bout_ref[...]
    o_ref[0] = out.astype(o_ref.dtype)


def fused_mha_pallas(x, w_qkv, b_qkv, w_out, b_out, *, heads):
    """Fused causal MHA forward. x: (B, S, E); weights stored as (in, out),
    qkv columns in torch's per-head interleaved [q|k|v] order (like the module)."""
    B, S, E = x.shape
    assert E % heads == 0
    head_d = E // heads

    # --------- one-time weight prep (would live at module init in prod) -----
    # 1) de-interleave per-head [q|k|v] columns -> head-major [Q_all|K_all|V_all]
    w_d = w_qkv.reshape(E, heads, 3, head_d).transpose(0, 2, 1, 3).reshape(E, 3 * E)
    b_d = b_qkv.reshape(heads, 3, head_d).transpose(1, 0, 2).reshape(3 * E)
    # 2) fold the 1/sqrt(Dh) softmax scale into the Q weight AND bias columns
    scale = 1.0 / math.sqrt(head_d)
    col_scale = jnp.concatenate([jnp.full((E,), scale, jnp.float32),
                                 jnp.ones((2 * E,), jnp.float32)])
    w_d = w_d * col_scale
    b_d = b_d * col_scale
    # 3) bf16 MXU operands (f32 accumulation inside the kernel)
    w_qkv_bf = w_d.astype(jnp.bfloat16)
    w_out_bf = w_out.astype(jnp.bfloat16)

    kernel = functools.partial(_fused_mha_kernel, heads=heads, head_d=head_d)

    # VMEM budget from the actual resident footprint (+headroom), capped for v7x.
    est = (
        2 * 2 * (E * 3 * E + E * E)        # bf16 weights x 2 pipeline buffers
        + 2 * 2 * 4 * S * E                # f32 x / out tiles x 2 buffers
        + 2 * S * 3 * E + 2 * S * E        # bf16 qkv / ctx scratch slabs
        + 4 * 4 * S * S + 8 * 4 * S * E    # score / exp temporaries + slack
    )
    vmem_limit = int(min(64 * 1024 * 1024, max(32 * 1024 * 1024, 2 * est)))

    return pl.pallas_call(
        kernel,
        out_shape=jax.ShapeDtypeStruct((B, S, E), x.dtype),
        grid=(B,),
        in_specs=[
            pl.BlockSpec((1, S, E), lambda b: (b, 0, 0)),      # x tile per batch
            pl.BlockSpec((E, 3 * E), lambda b: (0, 0)),        # W_qkv (resident)
            pl.BlockSpec((1, 3 * E), lambda b: (0, 0)),        # b_qkv
            pl.BlockSpec((E, E), lambda b: (0, 0)),            # W_out (resident)
            pl.BlockSpec((1, E), lambda b: (0, 0)),            # b_out
        ],
        out_specs=pl.BlockSpec((1, S, E), lambda b: (b, 0, 0)),
        scratch_shapes=[
            pltpu.VMEM((S, 3 * E), jnp.bfloat16),              # qkv slab
            pltpu.VMEM((S, E), jnp.bfloat16),                  # ctx slab
        ],
        compiler_params=pltpu.CompilerParams(
            dimension_semantics=("parallel",),                 # batch axis
            vmem_limit_bytes=vmem_limit,
        ),
    )(x, w_qkv_bf, b_d.reshape(1, 3 * E), w_out_bf, b_out.reshape(1, E))


# ------------------------------- Module port -------------------------------- #

class MultiHeadAttentionPallas:
    def __init__(self, emb_d, heads, key):
        assert emb_d % heads == 0
        self.emb_d = emb_d
        self.heads = heads
        self.head_d = emb_d // heads
        k1, k2, k3, k4 = jax.random.split(key, 4)
        # Shapes match the torch Linear layers, stored transposed as (in, out)
        # so y = x @ W + b; qkv columns in torch's per-head interleaved order.
        self.w_qkv = 0.02 * jax.random.normal(k1, (emb_d, 3 * emb_d), jnp.float32)
        self.b_qkv = 0.02 * jax.random.normal(k2, (3 * emb_d,), jnp.float32)
        self.w_out = 0.02 * jax.random.normal(k3, (emb_d, emb_d), jnp.float32)
        self.b_out = 0.02 * jax.random.normal(k4, (emb_d,), jnp.float32)

    def __call__(self, x):
        return fused_mha_pallas(x, self.w_qkv, self.b_qkv, self.w_out, self.b_out,
                                heads=self.heads)


# ----------------------------- pure-JAX reference --------------------------- #

def mha_reference(x, w_qkv, b_qkv, w_out, b_out, heads):
    B, S, E = x.shape
    Dh = E // heads
    qkv = x @ w_qkv + b_qkv
    qkv = qkv.reshape(B, S, heads, 3 * Dh).transpose(0, 2, 1, 3)   # (B, H, S, 3Dh)
    q, k, v = qkv[..., :Dh], qkv[..., Dh:2 * Dh], qkv[..., 2 * Dh:]
    s = jnp.einsum('bhqd,bhkd->bhqk', q, k) / math.sqrt(Dh)
    mask = jnp.tril(jnp.ones((S, S), dtype=bool))
    s = jnp.where(mask, s, -jnp.inf)
    p = jax.nn.softmax(s, axis=-1)
    ctx = jnp.einsum('bhqk,bhkd->bhqd', p, v)
    ctx = ctx.transpose(0, 2, 1, 3).reshape(B, S, E)
    return ctx @ w_out + b_out


if __name__ == "__main__":
    # DecoderConfig-ish small shapes: batch=2, seq=8, emb_d=32, heads=4, att_drop=0.0
    B, S, E, H = 2, 8, 32, 4

    key = jax.random.PRNGKey(0)
    kx, kp = jax.random.split(key)
    x = jax.random.normal(kx, (B, S, E), jnp.float32)

    mha = MultiHeadAttentionPallas(emb_d=E, heads=H, key=kp)
    y = jax.block_until_ready(mha(x))

    assert y.shape == (B, S, E), y.shape
    assert jnp.all(jnp.isfinite(y)), "non-finite output"

    # Correctness vs. pure-JAX f32 reference (bf16 MXU operands => loose tolerance).
    y_ref = mha_reference(x, mha.w_qkv, mha.b_qkv, mha.w_out, mha.b_out, H)
    assert jnp.allclose(y, y_ref, rtol=5e-2, atol=1e-2), \
        float(jnp.max(jnp.abs(y - y_ref)))

    print("KERNEL_OK")
</pallas_src>

<mosaic_0001>
module attributes {stable_mosaic.version = 11 : i64} {
  func.func @_fused_mha_kernel(%arg0: i32, %arg1: memref<1x8x32xf32, #tpu.memory_space<vmem>>, %arg2: memref<32x96xbf16, #tpu.memory_space<vmem>>, %arg3: memref<1x96xf32, #tpu.memory_space<vmem>>, %arg4: memref<32x32xbf16, #tpu.memory_space<vmem>>, %arg5: memref<1x32xf32, #tpu.memory_space<vmem>>, %arg6: memref<1x8x32xf32, #tpu.memory_space<vmem>>, %arg7: memref<8x96xbf16, #tpu.memory_space<vmem>>, %arg8: memref<8x32xbf16, #tpu.memory_space<vmem>>) attributes {dimension_semantics = [#tpu.dimension_semantics<parallel>], iteration_bounds = array<i64: 2>, scalar_prefetch = 0 : i64, scratch_operands = 2 : i64, tpu.core_type = #tpu.core_type<tc>, window_params = [{transform_indices = @transform_0, window_bounds = array<i64: 1, 8, 32>}, {pipeline_mode = #tpu.pipeline_mode<synchronous>, transform_indices = @transform_1, window_bounds = array<i64: 32, 96>}, {pipeline_mode = #tpu.pipeline_mode<synchronous>, transform_indices = @transform_2, window_bounds = array<i64: 1, 96>}, {pipeline_mode = #tpu.pipeline_mode<synchronous>, transform_indices = @transform_3, window_bounds = array<i64: 32, 32>}, {pipeline_mode = #tpu.pipeline_mode<synchronous>, transform_indices = @transform_4, window_bounds = array<i64: 1, 32>}, {transform_indices = @transform_5, window_bounds = array<i64: 1, 8, 32>}]} {
    %c0 = arith.constant 0 : index
    %c0_0 = arith.constant 0 : index
    %c0_1 = arith.constant 0 : index
    %0 = vector.load %arg1[%c0, %c0_0, %c0_1] : memref<1x8x32xf32, #tpu.memory_space<vmem>>, vector<1x8x32xf32>
    %1 = vector.shape_cast %0 : vector<1x8x32xf32> to vector<8x32xf32>
    %2 = arith.truncf %1 : vector<8x32xf32> to vector<8x32xbf16>
    %c0_2 = arith.constant 0 : index
    %c0_3 = arith.constant 0 : index
    %3 = vector.load %arg2[%c0_2, %c0_3] : memref<32x96xbf16, #tpu.memory_space<vmem>>, vector<32x96xbf16>
    %cst = arith.constant dense<0.000000e+00> : vector<8x96xf32>
    %4 = tpu.matmul %2, %3, %cst {dimension_numbers = #tpu.dot_dimension_numbers<[1], [0], [0], [1], [0, 0, 1, 1], [], []>} : vector<8x32xbf16>, vector<32x96xbf16>, vector<8x96xf32> -> vector<8x96xf32>
    %c0_4 = arith.constant 0 : index
    %c0_5 = arith.constant 0 : index
    %5 = vector.load %arg3[%c0_4, %c0_5] : memref<1x96xf32, #tpu.memory_space<vmem>>, vector<1x96xf32>
    %6 = vector.broadcast %5 : vector<1x96xf32> to vector<8x96xf32>
    %7 = arith.addf %4, %6 : vector<8x96xf32>
    %8 = arith.truncf %7 : vector<8x96xf32> to vector<8x96xbf16>
    %c0_6 = arith.constant 0 : index
    %c0_7 = arith.constant 0 : index
    %9 = vector.load %arg7[%c0_6, %c0_7] : memref<8x96xbf16, #tpu.memory_space<vmem>>, vector<8x96xbf16>
    tpu.vector_store %arg7[%c0_6, %c0_7], %8 {strides = array<i32>} : memref<8x96xbf16, #tpu.memory_space<vmem>>, vector<8x96xbf16>,
    %10 = tpu.iota {dimensions = array<i32: 0>} : vector<8x8xi32>
    %11 = tpu.iota {dimensions = array<i32: 1>} : vector<8x8xi32>
    %12 = arith.cmpi sle, %11, %10 : vector<8x8xi32>
    %cst_8 = arith.constant 0.000000e+00 : f32
    %cst_9 = arith.constant -1.000000e+30 : f32
    %13 = vector.broadcast %cst_8 : f32 to vector<8x8xf32>
    %14 = vector.broadcast %cst_9 : f32 to vector<8x8xf32>
    %15 = arith.select %12, %13, %14 : vector<8x8xi1>, vector<8x8xf32>
    %c0_10 = arith.constant 0 : index
    %c0_11 = arith.constant 0 : index
    %16 = vector.load %arg7[%c0_10, %c0_11] : memref<8x96xbf16, #tpu.memory_space<vmem>>, vector<8x8xbf16>
    %c0_12 = arith.constant 0 : index
    %c32 = arith.constant 32 : index
    %17 = vector.load %arg7[%c0_12, %c32] : memref<8x96xbf16, #tpu.memory_space<vmem>>, vector<8x8xbf16>
    %c0_13 = arith.constant 0 : index
    %c64 = arith.constant 64 : index
    %18 = vector.load %arg7[%c0_13, %c64] : memref<8x96xbf16, #tpu.memory_space<vmem>>, vector<8x8xbf16>
    %cst_14 = arith.constant dense<0.000000e+00> : vector<8x8xf32>
    %19 = tpu.matmul %16, %17, %cst_14 {dimension_numbers = #tpu.dot_dimension_numbers<[1], [1], [0], [0], [0, 0, 1, 0], [], []>} : vector<8x8xbf16>, vector<8x8xbf16>, vector<8x8xf32> -> vector<8x8xf32>
    %20 = arith.addf %19, %15 : vector<8x8xf32>
    %cst_15 = arith.constant dense<0xFF800000> : vector<8xf32>
    %21 = vector.multi_reduction <maximumf>, %20, %cst_15 [1] : vector<8x8xf32> to vector<8xf32>
    %22 = vector.shape_cast %21 : vector<8xf32> to vector<8x1xf32>
    %23 = vector.broadcast %22 : vector<8x1xf32> to vector<8x8xf32>
    %24 = arith.subf %20, %23 : vector<8x8xf32>
    %25 = math.exp %24 : vector<8x8xf32>
    %cst_16 = arith.constant dense<0.000000e+00> : vector<8xf32>
    %26 = vector.multi_reduction <add>, %25, %cst_16 [1] : vector<8x8xf32> to vector<8xf32>
    %27 = vector.shape_cast %26 : vector<8xf32> to vector<8x1xf32>
    %28 = arith.truncf %25 : vector<8x8xf32> to vector<8x8xbf16>
    %cst_17 = arith.constant dense<0.000000e+00> : vector<8x8xf32>
    %29 = tpu.matmul %28, %18, %cst_17 {dimension_numbers = #tpu.dot_dimension_numbers<[1], [0], [0], [1], [0, 0, 1, 1], [], []>} : vector<8x8xbf16>, vector<8x8xbf16>, vector<8x8xf32> -> vector<8x8xf32>
    %30 = tpu.reciprocal %27 {approx = true} : vector<8x1xf32> -> vector<8x1xf32>
    %31 = vector.broadcast %30 : vector<8x1xf32> to vector<8x8xf32>
    %32 = arith.mulf %29, %31 : vector<8x8xf32>
    %33 = arith.truncf %32 : vector<8x8xf32> to vector<8x8xbf16>
    %c0_18 = arith.constant 0 : index
    %c0_19 = arith.constant 0 : index
    %34 = vector.load %arg8[%c0_18, %c0_19] : memref<8x32xbf16, #tpu.memory_space<vmem>>, vector<8x8xbf16>
    tpu.vector_store %arg8[%c0_18, %c0_19], %33 {strides = array<i32>} : memref<8x32xbf16, #tpu.memory_space<vmem>>, vector<8x8xbf16>,
    %c0_20 = arith.constant 0 : index
    %c8 = arith.constant 8 : index
    %35 = vector.load %arg7[%c0_20, %c8] : memref<8x96xbf16, #tpu.memory_space<vmem>>, vector<8x8xbf16>
    %c0_21 = arith.constant 0 : index
    %c40 = arith.constant 40 : index
    %36 = vector.load %arg7[%c0_21, %c40] : memref<8x96xbf16, #tpu.memory_space<vmem>>, vector<8x8xbf16>
    %c0_22 = arith.constant 0 : index
    %c72 = arith.constant 72 : index
    %37 = vector.load %arg7[%c0_22, %c72] : memref<8x96xbf16, #tpu.memory_space<vmem>>, vector<8x8xbf16>
    %cst_23 = arith.constant dense<0.000000e+00> : vector<8x8xf32>
    %38 = tpu.matmul %35, %36, %cst_23 {dimension_numbers = #tpu.dot_dimension_numbers<[1], [1], [0], [0], [0, 0, 1, 0], [], []>} : vector<8x8xbf16>, vector<8x8xbf16>, vector<8x8xf32> -> vector<8x8xf32>
    %39 = arith.addf %38, %15 : vector<8x8xf32>
    %cst_24 = arith.constant dense<0xFF800000> : vector<8xf32>
    %40 = vector.multi_reduction <maximumf>, %39, %cst_24 [1] : vector<8x8xf32> to vector<8xf32>
    %41 = vector.shape_cast %40 : vector<8xf32> to vector<8x1xf32>
    %42 = vector.broadcast %41 : vector<8x1xf32> to vector<8x8xf32>
    %43 = arith.subf %39, %42 : vector<8x8xf32>
    %44 = math.exp %43 : vector<8x8xf32>
    %cst_25 = arith.constant dense<0.000000e+00> : vector<8xf32>
    %45 = vector.multi_reduction <add>, %44, %cst_25 [1] : vector<8x8xf32> to vector<8xf32>
    %46 = vector.shape_cast %45 : vector<8xf32> to vector<8x1xf32>
    %47 = arith.truncf %44 : vector<8x8xf32> to vector<8x8xbf16>
    %cst_26 = arith.constant dense<0.000000e+00> : vector<8x8xf32>
    %48 = tpu.matmul %47, %37, %cst_26 {dimension_numbers = #tpu.dot_dimension_numbers<[1], [0], [0], [1], [0, 0, 1, 1], [], []>} : vector<8x8xbf16>, vector<8x8xbf16>, vector<8x8xf32> -> vector<8x8xf32>
    %49 = tpu.reciprocal %46 {approx = true} : vector<8x1xf32> -> vector<8x1xf32>
    %50 = vector.broadcast %49 : vector<8x1xf32> to vector<8x8xf32>
    %51 = arith.mulf %48, %50 : vector<8x8xf32>
    %52 = arith.truncf %51 : vector<8x8xf32> to vector<8x8xbf16>
    %c0_27 = arith.constant 0 : index
    %c8_28 = arith.constant 8 : index
    %53 = vector.load %arg8[%c0_27, %c8_28] : memref<8x32xbf16, #tpu.memory_space<vmem>>, vector<8x8xbf16>
    tpu.vector_store %arg8[%c0_27, %c8_28], %52 {strides = array<i32>} : memref<8x32xbf16, #tpu.memory_space<vmem>>, vector<8x8xbf16>,
    %c0_29 = arith.constant 0 : index
    %c16 = arith.constant 16 : index
    %54 = vector.load %arg7[%c0_29, %c16] : memref<8x96xbf16, #tpu.memory_space<vmem>>, vector<8x8xbf16>
    %c0_30 = arith.constant 0 : index
    %c48 = arith.constant 48 : index
    %55 = vector.load %arg7[%c0_30, %c48] : memref<8x96xbf16, #tpu.memory_space<vmem>>, vector<8x8xbf16>
    %c0_31 = arith.constant 0 : index
    %c80 = arith.constant 80 : index
    %56 = vector.load %arg7[%c0_31, %c80] : memref<8x96xbf16, #tpu.memory_space<vmem>>, vector<8x8xbf16>
    %cst_32 = arith.constant dense<0.000000e+00> : vector<8x8xf32>
    %57 = tpu.matmul %54, %55, %cst_32 {dimension_numbers = #tpu.dot_dimension_numbers<[1], [1], [0], [0], [0, 0, 1, 0], [], []>} : vector<8x8xbf16>, vector<8x8xbf16>, vector<8x8xf32> -> vector<8x8xf32>
    %58 = arith.addf %57, %15 : vector<8x8xf32>
    %cst_33 = arith.constant dense<0xFF800000> : vector<8xf32>
    %59 = vector.multi_reduction <maximumf>, %58, %cst_33 [1] : vector<8x8xf32> to vector<8xf32>
    %60 = vector.shape_cast %59 : vector<8xf32> to vector<8x1xf32>
    %61 = vector.broadcast %60 : vector<8x1xf32> to vector<8x8xf32>
    %62 = arith.subf %58, %61 : vector<8x8xf32>
    %63 = math.exp %62 : vector<8x8xf32>
    %cst_34 = arith.constant dense<0.000000e+00> : vector<8xf32>
    %64 = vector.multi_reduction <add>, %63, %cst_34 [1] : vector<8x8xf32> to vector<8xf32>
    %65 = vector.shape_cast %64 : vector<8xf32> to vector<8x1xf32>
    %66 = arith.truncf %63 : vector<8x8xf32> to vector<8x8xbf16>
    %cst_35 = arith.constant dense<0.000000e+00> : vector<8x8xf32>
    %67 = tpu.matmul %66, %56, %cst_35 {dimension_numbers = #tpu.dot_dimension_numbers<[1], [0], [0], [1], [0, 0, 1, 1], [], []>} : vector<8x8xbf16>, vector<8x8xbf16>, vector<8x8xf32> -> vector<8x8xf32>
    %68 = tpu.reciprocal %65 {approx = true} : vector<8x1xf32> -> vector<8x1xf32>
    %69 = vector.broadcast %68 : vector<8x1xf32> to vector<8x8xf32>
    %70 = arith.mulf %67, %69 : vector<8x8xf32>
    %71 = arith.truncf %70 : vector<8x8xf32> to vector<8x8xbf16>
    %c0_36 = arith.constant 0 : index
    %c16_37 = arith.constant 16 : index
    %72 = vector.load %arg8[%c0_36, %c16_37] : memref<8x32xbf16, #tpu.memory_space<vmem>>, vector<8x8xbf16>
    tpu.vector_store %arg8[%c0_36, %c16_37], %71 {strides = array<i32>} : memref<8x32xbf16, #tpu.memory_space<vmem>>, vector<8x8xbf16>,
    %c0_38 = arith.constant 0 : index
    %c24 = arith.constant 24 : index
    %73 = vector.load %arg7[%c0_38, %c24] : memref<8x96xbf16, #tpu.memory_space<vmem>>, vector<8x8xbf16>
    %c0_39 = arith.constant 0 : index
    %c56 = arith.constant 56 : index
    %74 = vector.load %arg7[%c0_39, %c56] : memref<8x96xbf16, #tpu.memory_space<vmem>>, vector<8x8xbf16>
    %c0_40 = arith.constant 0 : index
    %c88 = arith.constant 88 : index
    %75 = vector.load %arg7[%c0_40, %c88] : memref<8x96xbf16, #tpu.memory_space<vmem>>, vector<8x8xbf16>
    %cst_41 = arith.constant dense<0.000000e+00> : vector<8x8xf32>
    %76 = tpu.matmul %73, %74, %cst_41 {dimension_numbers = #tpu.dot_dimension_numbers<[1], [1], [0], [0], [0, 0, 1, 0], [], []>} : vector<8x8xbf16>, vector<8x8xbf16>, vector<8x8xf32> -> vector<8x8xf32>
    %77 = arith.addf %76, %15 : vector<8x8xf32>
    %cst_42 = arith.constant dense<0xFF800000> : vector<8xf32>
    %78 = vector.multi_reduction <maximumf>, %77, %cst_42 [1] : vector<8x8xf32> to vector<8xf32>
    %79 = vector.shape_cast %78 : vector<8xf32> to vector<8x1xf32>
    %80 = vector.broadcast %79 : vector<8x1xf32> to vector<8x8xf32>
    %81 = arith.subf %77, %80 : vector<8x8xf32>
    %82 = math.exp %81 : vector<8x8xf32>
    %cst_43 = arith.constant dense<0.000000e+00> : vector<8xf32>
    %83 = vector.multi_reduction <add>, %82, %cst_43 [1] : vector<8x8xf32> to vector<8xf32>
    %84 = vector.shape_cast %83 : vector<8xf32> to vector<8x1xf32>
    %85 = arith.truncf %82 : vector<8x8xf32> to vector<8x8xbf16>
    %cst_44 = arith.constant dense<0.000000e+00> : vector<8x8xf32>
    %86 = tpu.matmul %85, %75, %cst_44 {dimension_numbers = #tpu.dot_dimension_numbers<[1], [0], [0], [1], [0, 0, 1, 1], [], []>} : vector<8x8xbf16>, vector<8x8xbf16>, vector<8x8xf32> -> vector<8x8xf32>
    %87 = tpu.reciprocal %84 {approx = true} : vector<8x1xf32> -> vector<8x1xf32>
    %88 = vector.broadcast %87 : vector<8x1xf32> to vector<8x8xf32>
    %89 = arith.mulf %86, %88 : vector<8x8xf32>
    %90 = arith.truncf %89 : vector<8x8xf32> to vector<8x8xbf16>
    %c0_45 = arith.constant 0 : index
    %c24_46 = arith.constant 24 : index
    %91 = vector.load %arg8[%c0_45, %c24_46] : memref<8x32xbf16, #tpu.memory_space<vmem>>, vector<8x8xbf16>
    tpu.vector_store %arg8[%c0_45, %c24_46], %90 {strides = array<i32>} : memref<8x32xbf16, #tpu.memory_space<vmem>>, vector<8x8xbf16>,
    %c0_47 = arith.constant 0 : index
    %c0_48 = arith.constant 0 : index
    %92 = vector.load %arg8[%c0_47, %c0_48] : memref<8x32xbf16, #tpu.memory_space<vmem>>, vector<8x32xbf16>
    %c0_49 = arith.constant 0 : index
    %c0_50 = arith.constant 0 : index
    %93 = vector.load %arg4[%c0_49, %c0_50] : memref<32x32xbf16, #tpu.memory_space<vmem>>, vector<32x32xbf16>
    %cst_51 = arith.constant dense<0.000000e+00> : vector<8x32xf32>
    %94 = tpu.matmul %92, %93, %cst_51 {dimension_numbers = #tpu.dot_dimension_numbers<[1], [0], [0], [1], [0, 0, 1, 1], [], []>} : vector<8x32xbf16>, vector<32x32xbf16>, vector<8x32xf32> -> vector<8x32xf32>
    %c0_52 = arith.constant 0 : index
    %c0_53 = arith.constant 0 : index
    %95 = vector.load %arg5[%c0_52, %c0_53] : memref<1x32xf32, #tpu.memory_space<vmem>>, vector<1x32xf32>
    %96 = vector.broadcast %95 : vector<1x32xf32> to vector<8x32xf32>
    %97 = arith.addf %94, %96 : vector<8x32xf32>
    %c0_54 = arith.constant 0 : index
    %c0_55 = arith.constant 0 : index
    %c0_56 = arith.constant 0 : index
    %98 = vector.load %arg6[%c0_54, %c0_55, %c0_56] : memref<1x8x32xf32, #tpu.memory_space<vmem>>, vector<1x8x32xf32>
    %99 = vector.shape_cast %98 : vector<1x8x32xf32> to vector<8x32xf32>
    %100 = vector.shape_cast %97 : vector<8x32xf32> to vector<1x8x32xf32>
    tpu.vector_store %arg6[%c0_54, %c0_55, %c0_56], %100 {strides = array<i32>} : memref<1x8x32xf32, #tpu.memory_space<vmem>>, vector<1x8x32xf32>,
    return
  }
  func.func @transform_0(%arg0: i32) -> (i32, i32, i32) {
    %c0_i32 = arith.constant 0 : i32
    %c0_i32_0 = arith.constant 0 : i32
    %c0_i32_1 = arith.constant 0 : i32
    return %arg0, %c0_i32, %c0_i32_0 : i32, i32, i32
  }
  func.func @transform_1(%arg0: i32) -> (i32, i32) {
    %c0_i32 = arith.constant 0 : i32
    %c0_i32_0 = arith.constant 0 : i32
    %c0_i32_1 = arith.constant 0 : i32
    return %c0_i32, %c0_i32_0 : i32, i32
  }
  func.func @transform_2(%arg0: i32) -> (i32, i32) {
    %c0_i32 = arith.constant 0 : i32
    %c0_i32_0 = arith.constant 0 : i32
    %c0_i32_1 = arith.constant 0 : i32
    return %c0_i32, %c0_i32_0 : i32, i32
  }
  func.func @transform_3(%arg0: i32) -> (i32, i32) {
    %c0_i32 = arith.constant 0 : i32
    %c0_i32_0 = arith.constant 0 : i32
    %c0_i32_1 = arith.constant 0 : i32
    return %c0_i32, %c0_i32_0 : i32, i32
  }
  func.func @transform_4(%arg0: i32) -> (i32, i32) {
    %c0_i32 = arith.constant 0 : i32
    %c0_i32_0 = arith.constant 0 : i32
    %c0_i32_1 = arith.constant 0 : i32
    return %c0_i32, %c0_i32_0 : i32, i32
  }
  func.func @transform_5(%arg0: i32) -> (i32, i32, i32) {
    %c0_i32 = arith.constant 0 : i32
    %c0_i32_0 = arith.constant 0 : i32
    %c0_i32_1 = arith.constant 0 : i32
    return %arg0, %c0_i32, %c0_i32_0 : i32, i32, i32
  }
}

</mosaic_0001>

<bundles_post_ra>
// kernel: tpu_custom_call.1
= control target key start
LH: loop header
LB: loop body
LE: loop exit
PB: predicated region body
PF: predicated region fallthrough
CT: control target
= control target key end

     0   :  { %10 = vsyncpa [#allocation5], 0  ;;  %s1771_s0 = inlined_call_operand.hbm [shape: f32[2,8,32], index: 0, kind: input, shape index: {}]   ;;  %s1772_s1 = inlined_call_operand.hbm [shape: bf16[32,96], index: 1, kind: input, shape index: {}]   ;;  %s1773_s2 = inlined_call_operand.vmem [shape: f32[1,96], index: 2, kind: input, shape index: {}]   ;;  %s1774_s3 = inlined_call_operand.hbm [shape: bf16[32,32], index: 3, kind: input, shape index: {}]   ;;  %s1775_s4 = inlined_call_operand.vmem [shape: f32[1,32], index: 4, kind: input, shape index: {}]   ;;  %s1776_s5 = inlined_call_operand.hbm [shape: f32[2,8,32], index: 5, kind: output, shape index: {}]  }
   0x1   :  { %12 = vsyncpa [#allocation5 + $0x1], 0 }
   0x2   :  { %13 = vsyncpa [#allocation8], 0 }
   0x3   :  { %14 = vsyncpa [#allocation6], 0 }
   0x4   :  { %16 = vsyncpa [#allocation6 + $0x1], 0  ;;  %s1454_s18 = smov 0   ;;  %s1456_s19 = smov 0  }
   0x5   :  { %s1458_s20 = smov 0   ;;  %s1460_s21 = smov 0  }
   0x6 LB: > { %s1475_s22 = sadd.s32 4294967295, %s1399_s21   ;;  %s1005_s23 = sadd.s32 4294967294, %s1399_s21   ;;  %s1399_s21 = sphi %s1460_s21, %s1796_s21   ;;  %s1395_s20 = sphi %s1458_s20, %s1795_s20   ;;  %s1391_s19 = sphi %s1456_s19, %s1794_s19   ;;  %s1387_s18 = sphi %s1454_s18, %s1793_s18  }
   0x7   : > { %p42_p0 = scmp.ne.s32.totalorder %s1391_s19, %s1387_s18  ;;  %p1777_p1 = scmp.eq.s32.totalorder %s1475_s22, 0 }
   0x8   : > { %p156_p3 = scmp.eq.s32.totalorder %s1005_s23, 1  ;;  %p1006_p5 = scmp.ge.s32.totalorder %s1399_s21, 1 }
   0x9   : > { %p1484_p4 = por %p1777_p1, %p42_p0  ;;  %p163_p7 = scmp.lt.s32.totalorder %s1399_s21, 3 }
   0xa   : > { %p1489_p6 = por %p156_p3, %p42_p0  ;;  %s1401_s27 = smov [#allocation7]  }
   0xb   : > { %s1780_s24 = scalar_select %p1484_p4, 1, 0 }
   0xc   : > { %s1781_s25 = scalar_select %p1489_p6, 1, 0 }
   0xd   : > { %p1494_p8 = pnand %p1006_p5, %p163_p7  ;;  %s175_s28 = sshll.u32 %s1401_s27, 4  ;;  %s1498_s28 = int_to_ptr.vmem [resolvable:$true] %s175_s28 }
   0xe   : > { %s1402_s30 = smov [#allocation9]   ;;  %s1243_s9 = scalar_lea.hbm %s1772_s1, 256 }
   0xf   : > { %p1145_p9 = pneg %p1494_p8  ;;  %s191_s6 = sshll.u32 %s1402_s30, 4  ;;  %s1509_s6 = int_to_ptr.vmem [resolvable:$true] %s191_s6 }
  0x10   : > { %p1244_p12 = scmp.ne.s32.totalorder %s1772_s1, %s1243_s9  ;;  %p1250_p5 = scmp.lt.u32.totalorder %s1243_s9, %s1772_s1 }
  0x11   : > { %p1505_p11 = pnand %p1145_p9, %p1777_p1 }
  0x13   : > { %p1245_p13 = pneg %p1505_p11 }
  0x15   : > { %p1246_p0 = pnand %p1245_p13, %p1244_p12 }
  0x17   : > { %p1247_p3 = pneg %p1246_p0 }
  0x19   : > { %p1252_p7 = pnand %p1250_p5, %p1247_p3 }
  0x1b   : > { %1255 = shalt.err (!%p1252_p7)
}
  0x1c   : > { %s1256_s14 = scalar_lea.vmem %s1498_s28, 256  ;;  %p1264_p2 = scmp.lt.s32.totalorder %s1498_s28, %s1498_s28 }
  0x1d   : > { %p1257_p9 = scmp.ne.s32.totalorder %s1498_s28, %s1256_s14  ;;  %p1265_p12 = scmp.lt.s32.totalorder %s1256_s14, %s1256_s14 }
  0x1f   : > { %p1259_p10 = pnand %p1257_p9, %p1245_p13  ;;  %p1266_p0 = por %p1265_p12, %p1264_p2 }
  0x21   : > { %p1260_p1 = pneg %p1259_p10 }
  0x23   : > { %p1267_p6 = pnand %p1266_p0, %p1260_p1 }
  0x25   : > { %1270 = shalt.err (!%p1267_p6)
}
  0x26   : > { %s1403_s15 = smov 64   ;;  %s1404_s16 = smov 4  }
  0x27   : > { %1148 = dma.hbm_to_vmem [thread:$0]  (!%p1505_p11), %s1772_s1, 256, %s1498_s28, [#allocation8], %s1403_s15, %s1403_s15, %s1404_s16  }
  0x28   : > { %s1271_s7 = scalar_lea.hbm %s1774_s3, 256 }
  0x29   : > { %p1272_p2 = scmp.ne.s32.totalorder %s1774_s3, %s1271_s7  ;;  %p1278_p10 = scmp.lt.u32.totalorder %s1271_s7, %s1774_s3 }
  0x2b   : > { %p1274_p1 = pnand %p1272_p2, %p1245_p13 }
  0x2d   : > { %p1275_p6 = pneg %p1274_p1 }
  0x2f   : > { %p1280_p3 = pnand %p1278_p10, %p1275_p6 }
  0x31   : > { %1283 = shalt.err (!%p1280_p3)
}
  0x32   : > { %s1284_s28 = scalar_lea.vmem %s1509_s6, 256  ;;  %p1292_p12 = scmp.lt.s32.totalorder %s1509_s6, %s1509_s6 }
  0x33   : > { %p1285_p5 = scmp.ne.s32.totalorder %s1509_s6, %s1284_s28  ;;  %p1293_p0 = scmp.lt.s32.totalorder %s1284_s28, %s1284_s28 }
  0x35   : > { %p1287_p7 = pnand %p1285_p5, %p1245_p13  ;;  %p1294_p2 = por %p1293_p0, %p1292_p12 }
  0x37   : > { %p1288_p9 = pneg %p1287_p7 }
  0x39   : > { %p1295_p1 = pnand %p1294_p2, %p1288_p9 }
  0x3b   : > { %1298 = shalt.err (!%p1295_p1)
}
  0x3c   : > { %1151 = dma.hbm_to_vmem [thread:$0]  (!%p1505_p11), %s1774_s3, 256, %s1509_s6, [#allocation8], %s1403_s15, %s1403_s15, %s1404_s16  }
  0x3d   : > { %s1564_s14 = sadd.s32 1, %s1399_s21   ;;  %s29_s29 = sadd.s32 1, %s1395_s20 }
  0x3e   : > { %s26_s17 = ssub.s32 %s1399_s21, %s1564_s14  ;;  %p36_p13 = scmp.ne.s32.totalorder %s1395_s20, %s1391_s19 }
  0x3f   : > { %p27_p6 = scmp.eq.s32.totalorder %s26_s17, 0  ;;  %p37_p10 = scmp.eq.s32.totalorder %s1399_s21, 0 }
  0x40   : > { %p1784_p3 = scmp.eq.s32.totalorder %s1475_s22, 1  ;;  %p1162_p7 = scmp.lt.s32.totalorder %s1399_s21, 2 }
  0x41   : > { %s1580_s27 = scalar_select %p27_p6, %s1395_s20, %s29_s29  }
  0x42   : > { %p1574_p5 = por %p1784_p3, %p36_p13  ;;  %p38_p9 = por %p37_p10, %p36_p13 }
  0x43   : > { %s208_s30 = sand.u32 1, %s1395_s20   ;;  %s1011_s6 = sshll.u32 %s1399_s21, 7 }
  0x44   : > { %s1785_s23 = scalar_select %p1574_p5, 1, 0 }
  0x45   : > { %s1010_s7 = sshll.u32 %s208_s30, 3  ;;  %s1587_s8 = scalar_lea.hbm %s1771_s0, %s1011_s6 }
  0x46   : > { %s212_s9 = scalar_lea.vmem [#allocation4], %s1010_s7  ;;  %p1591_p11 = pnand %p1162_p7, %p38_p9 }
  0x47   : > { %s219_s10 = sshll.u32 %s212_s9, 4  ;;  %s209_s28 = scalar_lea.sflag [#allocation5], %s208_s30  ;;  %s1589_s10 = int_to_ptr.vmem [resolvable:$true] %s219_s10 }
  0x48   : > { %s1299_s12 = scalar_lea.hbm %s1587_s8, 128  ;;  %p1301_p0 = pneg %p1591_p11 }
  0x49   : > { %p1300_p12 = scmp.ne.s32.totalorder %s1587_s8, %s1299_s12  ;;  %s1304_s17 = scalar_lea.hbm %s1771_s0, 256 }
  0x4a   : > { %p1305_p13 = scmp.lt.u32.totalorder %s1587_s8, %s1771_s0  ;;  %p1306_p6 = scmp.lt.u32.totalorder %s1304_s17, %s1299_s12 }
  0x4b   : > { %p1302_p2 = pnand %p1301_p0, %p1300_p12  ;;  %p1308_p3 = scmp.lt.u32.totalorder %s1299_s12, %s1587_s8 }
  0x4c   : > { %p1307_p10 = por %p1306_p6, %p1305_p13 }
  0x4d   : > { %p1303_p1 = pneg %p1302_p2 }
  0x4e   : > { %p1309_p7 = por %p1308_p3, %p1307_p10 }
  0x50   : > { %p1310_p9 = pnand %p1309_p7, %p1303_p1 }
  0x52   : > { %1313 = shalt.err (!%p1310_p9)
}
  0x53   : > { %s1314_s30 = scalar_lea.vmem %s1589_s10, 128  ;;  %s1405_s15 = smov [#allocation4]  }
  0x54   : > { %p1315_p12 = scmp.ne.s32.totalorder %s1589_s10, %s1314_s30  ;;  %s1319_s16 = sshll.u32 %s1405_s15, 4  ;;  %s1320_s16 = int_to_ptr.vmem [resolvable:$false] %s1319_s16 }
  0x55   : > { %s1321_s9 = scalar_lea.vmem %s1320_s16, 256  ;;  %p1322_p4 = scmp.lt.s32.totalorder %s1589_s10, %s1320_s16 }
  0x56   : > { %p1317_p2 = pnand %p1315_p12, %p1301_p0  ;;  %p1323_p13 = scmp.lt.s32.totalorder %s1321_s9, %s1314_s30 }
  0x58   : > { %p1318_p5 = pneg %p1317_p2  ;;  %p1324_p6 = por %p1323_p13, %p1322_p4 }
  0x5a   : > { %p1325_p10 = pnand %p1324_p6, %p1318_p5 }
  0x5c   : > { %1328 = shalt.err (!%p1325_p10)
}
  0x5d   : > { %1155 = dma.hbm_to_vmem [thread:$0]  (!%p1591_p11), %s1587_s8, 128, %s1589_s10, %s209_s28  }
  0x5e   : > { %228 = sbr.rel (%p1494_p8) target bundleno = 1459 (0x5b3), region = 40  ;;  %s1623_s12 = sand.u32 (!%p1494_p8), 1, %s1391_s19  }
  0x5f   : > { %s1013_s13 = sshll.u32 (!%p1494_p8), %s1623_s12, 3  ;;  %s231_s29 = scalar_lea.sflag (!%p1494_p8), [#allocation5], %s1623_s12 }
  0x60   : > { %s234_s17 = scalar_lea.vmem (!%p1494_p8), [#allocation4], %s1013_s13  ;;  %p1787_p4 = scmp.ne.s32.totalorder (!%p1494_p8), %s1780_s24, 0 }
  0x65   : > { %1374 = dma.done.wait (%p1787_p4), %s231_s29, 128  }
  0x66   : > { %1376 = vsyncadd (%p1787_p4), %s231_s29, 4294967168  ;;  %p1788_p5 = scmp.eq.s32.totalorder %s1475_s22, 0 }
  0x68   : > { %1378 = dma.done.wait (%p1788_p5), [#allocation8], 512   ;;  %p1789_p8 = pmov %p1788_p5 }
  0x69   : > { %v1406_v0 = vmov 0.0   ;;  %vm1407_vm0 = vmmov 0   ;;  %v1219_v1 = vld [vmem:[#allocation7] sm:$0xff]   ;;  %v1220_v2 = vld [vmem:[#allocation7 + $0x8] sm:$0xff]   ;;  %v270_v3 = vld [vmem:[%s234_s17] sm:$0xff]  ;;  %vm295_vm1 = vcmask 261120   ;;  %v342_v28 = vlaneseq }
  0x6a   : > { %1380 = vsyncadd (%p1789_p8), [#allocation8], 4294966784  ;;  %1069 = vmatprep.subr.bf16.mxu0 %v1406_v0  ;;  %1073 = vmatprep.mubr.msk.bf16.mxu0 %vm1407_vm0, %v1406_v0  ;;  %v271_v4 = vpack.c.bf16 %v270_v3, %v270_v3  ;;  %v1017_v5 = vld [vmem:[%s1773_s2] ss:$0 sm:$0xff]  ;;  %vm340_vm2 = vcmask 781312   ;;  %s1408_s8 = smov 120  }
  0x6b   : > { %1077 = vmatprep.subr.bf16.mxu1 %v1406_v0  ;;  %1079 = vmatprep.mubr.msk.bf16.mxu1 %vm1407_vm0, %v1406_v0  ;;  %s1409_s10 = smov 96   ;;  %s1410_s11 = smov 80   ;;  %vm354_vm3 = vcmask 64512   ;;  %v343_v29 = vshrl.u32 %v342_v28, 7  ;;  %v345_v30 = vand.u32 127, %v342_v28  ;;  %vm416_vm5 = vcmask 1043456  }
  0x6c   : > { %1070 = vmatpush3.bf16.msra.mxu0 %v1219_v1  ;;  %s1411_s28 = smov 88   ;;  %s1412_s7 = smov 72   ;;  %v1415_v31 = vmov -1e+30   ;;  %vm463_vm6 = vcmask 60416   ;;  %vm586_vm7 = vcmask 126016  }
  0x6d   : > { %1071 = vmatprep.subr.bf16.mxu0 %v1406_v0  ;;  %s1413_s6 = smov 112   ;;  %s1414_s30 = smov 104   ;;  %vm346_vm4 = vcmp.le.s32.totalorder %v345_v30, %v343_v29  ;;  %vm709_vm8 = vcmask 191616   ;;  %vm832_vm9 = vcmask 257216  }
  0x6e   : > { %v347_v32 = vsel %vm346_vm4, 0.0, %v1415_v31  ;;  %s1416_s15 = smov 56   ;;  %s1417_s16 = smov 64  }
  0x6f   : > { %s1418_s9 = smov 40   ;;  %s1419_s29 = smov 48  }
  0x70   : > { %1072 = vmatpush3.bf16.msra.mxu0 %v1220_v2  ;;  %s1420_s17 = smov 8   ;;  %s1421_s24 = smov 16  }
  0x71   : > { %1083 = vmatprep.subr.bf16.mxu0 %v1406_v0  ;;  %s1422_s26 = smov 24   ;;  %p1790_p0 = scmp.ne.s32.totalorder %s1785_s23, 0 }
  0x73   : > { %1074 = vmatmul.mubr.msk.bf16.vlgmr.msra.gmra.mrb[0].mxu0 %vm295_vm1, %v271_v4 }
  0x74   : > { %1085 = vmatprep.mubr.msk.bf16.mxu0 %vm1407_vm0, %v1406_v0 }
 0x146   : > { %v333_v6 = vpop.f32.mrb[0].mxu0 }
 0x147   : > { %v334_v7 = vadd.f32 %v1017_v5, %v333_v6  ;;  %v1075_v8 = vpop.f32.mrb[1].mxu0 }
 0x148   : > { %v336_v9 = vpop.f32.mrb[2].mxu0 }
 0x149   : > { %v339_v10 = vpack.c.bf16 %v334_v7, %v334_v7  ;;  %v1076_v11 = vpop.f32.mrb[3].mxu0 }
 0x14b   : > { %341 = vst.msk [vmem:[#allocation2] sm:$0xf] %vm340_vm2, %v339_v10 }
 0x152   : > { %v1651_v12 = vld [vmem:[#allocation2] ss:$0 sps:$4 sm:$0xff]  }
 0x153   : > { %v348_v13 = vld [vmem:[#allocation2] sm:$0xf]  ;;  %469 = vrot.lane.b32.xlu1 %v1651_v12, %s1408_s8 }
 0x154   : > { %v1653_v14 = vcombine.low %v348_v13, %v348_v13  ;;  %v1657_v15 = vld [vmem:[#allocation2] ss:$0 sps:$4 sm:$0xff]  }
 0x155   : > { %v1661_v16 = vld [vmem:[#allocation2] ss:$0 sps:$4 sm:$0xff]  }
 0x156   : > { %352 = vrot.lane.b32.xlu0 %v1653_v14, %s1409_s10 }
 0x157   : > { %594 = vrot.lane.b32.xlu1 %v1657_v15, %s1410_s11  ;;  %s1041_s11 = sshll.u32 %s1475_s22, 7  ;;  %s903_s22 = scalar_lea.sflag [#allocation6], %s1623_s12 }
 0x15a   : > { %471 = vrot.lane.b32.xlu0 %v1651_v12, %s1411_s28  ;;  %s268_s28 = scalar_lea.vmem [#allocation10], %s1013_s13 }
 0x15b   : > { %717 = vrot.lane.b32.xlu1 %v1661_v16, %s1412_s7  ;;  %s916_s7 = sshll.u32 %s268_s28, 4  ;;  %s1728_s7 = int_to_ptr.vmem [resolvable:$true] %s916_s7 }
 0x15c   : > { %s1329_s13 = scalar_lea.vmem %s1728_s7, 128 }
 0x15d   : > { %p1330_p11 = scmp.ne.s32.totalorder %s1728_s7, %s1329_s13 }
 0x15e   : > { %592 = vrot.lane.b32.xlu0 %v1657_v15, %s1413_s6 }
 0x15f   : > { %p1331_p1 = pnand %p1330_p11, %p1790_p0 }
 0x161   : > { %p1332_p3 = pneg %p1331_p1 }
 0x162   : > { %715 = vrot.lane.b32.xlu0 %v1661_v16, %s1414_s30 }
 0x1c5   : > { %v470_v20 = vpop.permute.xlu1 %469 }
 0x1c8   : > { %v353_v17 = vpop.permute.xlu0 %352 }
 0x1c9   : > { %v359_v18 = vsel %vm354_vm3, %v353_v17, 0  ;;  %v595_v22 = vpop.permute.xlu1 %594 }
 0x1ca   : > { %1078 = vmatpush3.bf16.xpose.msra.mxu1 %v359_v18  ;;  %v600_v23 = vsel %vm354_vm3, %v595_v22, 0 }
 0x1cb   : > { %1089 = vmatprep.subr.bf16.mxu1 %v1406_v0 }
 0x1cc   : > { %v472_v19 = vpop.permute.xlu0 %471 }
 0x1cd   : > { %v477_v21 = vsel %vm354_vm3, %v472_v19, 0  ;;  %v718_v24 = vpop.permute.xlu1 %717 }
 0x1ce   : > { %v723_v26 = vsel %vm354_vm3, %v718_v24, 0 }
 0x1d0   : > { %v593_v25 = vpop.permute.xlu0 %592 }
 0x1d1   : > { %1080 = vmatmul.mubr.msk.bf16.vlgmr.msra.gmra.mrb[0].mxu1 %vm354_vm3, %v348_v13 }
 0x1d2   : > { %1090 = vmatpush3.bf16.xpose.msra.mxu1 %v477_v21  ;;  %1091 = vmatprep.mubr.msk.bf16.mxu1 %vm1407_vm0, %v1406_v0 }
 0x1d3   : > { %1101 = vmatprep.subr.bf16.mxu1 %v1406_v0 }
 0x1d4   : > { %v716_v27 = vpop.permute.xlu0 %715 }
 0x1d9   : > { %1092 = vmatmul.mubr.msk.bf16.vlgmr.msra.gmra.mrb[4].mxu1 %vm354_vm3, %v470_v20 }
 0x1da   : > { %1102 = vmatpush3.bf16.xpose.msra.mxu1 %v600_v23  ;;  %1103 = vmatprep.mubr.msk.bf16.mxu1 %vm1407_vm0, %v1406_v0 }
 0x1db   : > { %1113 = vmatprep.subr.bf16.mxu1 %v1406_v0 }
 0x1e1   : > { %1104 = vmatmul.mubr.msk.bf16.vlgmr.msra.gmra.mrb[8].mxu1 %vm354_vm3, %v593_v25 }
 0x1e2   : > { %1114 = vmatpush3.bf16.xpose.msra.mxu1 %v723_v26  ;;  %1115 = vmatprep.mubr.msk.bf16.mxu1 %vm1407_vm0, %v1406_v0 }
 0x1e3   : > { %1125 = vmatprep.subr.bf16.mxu1 %v1406_v0 }
 0x1e9   : > { %1116 = vmatmul.mubr.msk.bf16.vlgmr.msra.gmra.mrb[12].mxu1 %vm354_vm3, %v716_v27 }
 0x1ea   : > { %1129 = vmatprep.mubr.msk.bf16.mxu1 %vm1407_vm0, %v1406_v0 }
 0x2a4   : > { %v395_v33 = vpop.f32.mrb[0].mxu1 }
 0x2a5   : > { %v396_v34 = vadd.f32 %v395_v33, %v347_v32  ;;  %v1081_v35 = vpop.f32.mrb[1].mxu1 }
 0x2a6   : > { %v398_v36 = vpop.f32.mrb[2].mxu1 }
 0x2a7   : > { %v1082_v37 = vpop.f32.mrb[3].mxu1  ;;  %v401_v38 = vsel %vm354_vm3, %v396_v34, -inf }
 0x2a8   : > { %402 = vmax.xlane.f32.xlu1 %v401_v38 }
 0x2ac   : > { %v513_v39 = vpop.f32.mrb[4].mxu1 }
 0x2ad   : > { %v514_v40 = vadd.f32 %v513_v39, %v347_v32  ;;  %v1093_v41 = vpop.f32.mrb[5].mxu1 }
 0x2ae   : > { %v516_v42 = vpop.f32.mrb[6].mxu1 }
 0x2af   : > { %v1094_v43 = vpop.f32.mrb[7].mxu1  ;;  %v519_v44 = vsel %vm354_vm3, %v514_v40, -inf }
 0x2b0   : > { %520 = vmax.xlane.f32.xlu0 %v519_v44 }
 0x2b4   : > { %v636_v45 = vpop.f32.mrb[8].mxu1 }
 0x2b5   : > { %v637_v46 = vadd.f32 %v636_v45, %v347_v32  ;;  %v1105_v47 = vpop.f32.mrb[9].mxu1 }
 0x2b6   : > { %v639_v48 = vpop.f32.mrb[10].mxu1 }
 0x2b7   : > { %v1106_v49 = vpop.f32.mrb[11].mxu1  ;;  %v642_v50 = vsel %vm354_vm3, %v637_v46, -inf  ;;  %v1225_v48 = vld [vmem:[#allocation9] sm:$0xff]  }
 0x2b8   : > { %643 = vmax.xlane.f32.xlu0 %v642_v50  ;;  %1126 = vmatpush3.bf16.msra.mxu1 %v1225_v48 }
 0x2b9   : > { %529 = vrot.lane.b32.xlu1 %v1651_v12, %s1416_s15  ;;  %1127 = vmatprep.subr.bf16.mxu1 %v1406_v0  ;;  %s1726_s15 = scalar_lea.hbm %s1776_s5, %s1041_s11 }
 0x2bc   : > { %v759_v51 = vpop.f32.mrb[12].mxu1 }
 0x2bd   : > { %v1117_v52 = vpop.f32.mrb[13].mxu1  ;;  %v760_v55 = vadd.f32 %v759_v51, %v347_v32 }
 0x2be   : > { %v762_v53 = vpop.f32.mrb[14].mxu1  ;;  %v1226_v52 = vld [vmem:[#allocation9 + $0x8] sm:$0xff]  }
 0x2bf   : > { %v1118_v54 = vpop.f32.mrb[15].mxu1  ;;  %v765_v56 = vsel %vm354_vm3, %v760_v55, -inf  ;;  %1128 = vmatpush3.bf16.msra.mxu1 %v1226_v52 }
 0x2ce   : > { %411 = vrot.lane.b32.xlu0 %v1653_v14, %s1417_s16  ;;  %s1423_s16 = smov [#allocation10]  }
 0x2d2   : > { %775 = vrot.lane.b32.xlu0 %v1661_v16, %s1418_s9  ;;  %s1333_s9 = sshll.u32 %s1423_s16, 4  ;;  %s1334_s9 = int_to_ptr.vmem [resolvable:$false] %s1333_s9 }
 0x2d3   : > { %p1336_p7 = scmp.lt.s32.totalorder %s1728_s7, %s1334_s9 }
 0x2dd   : > { %766 = vmax.xlane.f32.xlu1 %v765_v56 }
 0x2ee   : > { %652 = vrot.lane.b32.xlu1 %v1657_v15, %s1419_s29  ;;  %s1335_s29 = scalar_lea.vmem %s1334_s9, 256 }
 0x2ef   : > { %p1337_p9 = scmp.lt.s32.totalorder %s1335_s29, %s1329_s13 }
 0x2f1   : > { %p1338_p12 = por %p1337_p9, %p1336_p7 }
 0x2f3   : > { %p1339_p2 = pnand %p1338_p12, %p1332_p3 }
 0x335   : > { %v403_v57 = vpop.xlane.xlu1 %402 }
 0x336   : > { %v404_v58 = vsub.f32 %v396_v34, %v403_v57 }
 0x338   : > { %v405_v59 = vmul.f32 1.442695, %v404_v58 }
 0x339   : > { %v530_v6 = vpop.permute.xlu1 %529 }
 0x33a   : > { %1227 = vpow2.f32 %v405_v59  ;;  %v535_v10 = vsel %vm416_vm5, %v530_v6, 0 }
 0x33d   : > { %v521_v60 = vpop.xlane.xlu0 %520 }
 0x33e   : > { %v522_v61 = vsub.f32 %v514_v40, %v521_v60 }
 0x340   : > { %v523_v62 = vmul.f32 1.442695, %v522_v61 }
 0x342   : > { %1229 = vpow2.f32 %v523_v62 }
 0x344   : > { %v1228_v3 = vpop.eup %1227 }
 0x345   : > { %v644_v63 = vpop.xlane.xlu0 %643  ;;  %v410_v8 = vpack.c.bf16 %v1228_v3, %v1228_v3  ;;  %v407_v11 = vsel %vm354_vm3, %v1228_v3, 0.0 }
 0x346   : > { %v645_v1 = vsub.f32 %v637_v46, %v644_v63  ;;  %v1036_v63 = vld [vmem:[%s1775_s4] ss:$0 sm:$0xff] }
 0x348   : > { %v646_v2 = vmul.f32 1.442695, %v645_v1 }
 0x349   : > { %v412_v4 = vpop.permute.xlu0 %411 }
 0x34a   : > { %1231 = vpow2.f32 %v646_v2  ;;  %v418_v5 = vsel %vm416_vm5, %v412_v4, 0 }
 0x34b   : > { %1084 = vmatpush3.bf16.msra.mxu0 %v418_v5 }
 0x34c   : > { %v1230_v7 = vpop.eup %1229  ;;  %1095 = vmatprep.subr.bf16.mxu0 %v1406_v0 }
 0x34d   : > { %v525_v9 = vsel %vm354_vm3, %v1230_v7, 0.0  ;;  %v528_v13 = vpack.c.bf16 %v1230_v7, %v1230_v7  ;;  %v776_v20 = vpop.permute.xlu0 %775 }
 0x34e   : > { %526 = vadd.xlane.f32.xlu1 %v525_v9  ;;  %1086 = vmatmul.mubr.msk.bf16.vlgmr.msra.gmra.mrb[4].mxu0 %vm354_vm3, %v410_v8  ;;  %v781_v22 = vsel %vm416_vm5, %v776_v20, 0 }
 0x34f   : > { %1096 = vmatpush3.bf16.msra.mxu0 %v535_v10  ;;  %1097 = vmatprep.mubr.msk.bf16.mxu0 %vm1407_vm0, %v1406_v0 }
 0x350   : > { %1107 = vmatprep.subr.bf16.mxu0 %v1406_v0 }
 0x352   : > { %408 = vadd.xlane.f32.xlu1 %v407_v11 }
 0x354   : > { %v1232_v12 = vpop.eup %1231 }
 0x355   : > { %v648_v14 = vsel %vm354_vm3, %v1232_v12, 0.0  ;;  %v651_v21 = vpack.c.bf16 %v1232_v12, %v1232_v12 }
 0x356   : > { %649 = vadd.xlane.f32.xlu0 %v648_v14  ;;  %1098 = vmatmul.mubr.msk.bf16.vlgmr.msra.gmra.mrb[8].mxu0 %vm354_vm3, %v528_v13 }
 0x357   : > { %1109 = vmatprep.mubr.msk.bf16.mxu0 %vm1407_vm0, %v1406_v0 }
 0x36a   : > { %v767_v15 = vpop.xlane.xlu1 %766 }
 0x36b   : > { %v768_v16 = vsub.f32 %v760_v55, %v767_v15 }
 0x36d   : > { %v769_v17 = vmul.f32 1.442695, %v768_v16 }
 0x36e   : > { %v653_v18 = vpop.permute.xlu1 %652 }
 0x36f   : > { %1233 = vpow2.f32 %v769_v17  ;;  %v658_v19 = vsel %vm416_vm5, %v653_v18, 0 }
 0x370   : > { %1108 = vmatpush3.bf16.msra.mxu0 %v658_v19 }
 0x371   : > { %1119 = vmatprep.subr.bf16.mxu0 %v1406_v0 }
 0x373   : > { %1110 = vmatmul.mubr.msk.bf16.vlgmr.msra.gmra.mrb[12].mxu0 %vm354_vm3, %v651_v21 }
 0x374   : > { %1120 = vmatpush3.bf16.msra.mxu0 %v781_v22  ;;  %1121 = vmatprep.mubr.msk.bf16.mxu0 %vm1407_vm0, %v1406_v0 }
 0x379   : > { %v1234_v23 = vpop.eup %1233 }
 0x37a   : > { %v771_v24 = vsel %vm354_vm3, %v1234_v23, 0.0  ;;  %v774_v25 = vpack.c.bf16 %v1234_v23, %v1234_v23 }
 0x37b   : > { %772 = vadd.xlane.f32.xlu0 %v771_v24 }
 0x37c   : > { %1122 = vmatmul.mubr.msk.bf16.vlgmr.msra.gmra.mrb[16].mxu0 %vm354_vm3, %v774_v25 }
 0x3db   : > { %v527_v26 = vpop.xlane.xlu1 %526 }
 0x3df   : > { %v409_v27 = vpop.xlane.xlu1 %408 }
 0x3e0   : > { %1235 = vrcp.f32 %v409_v27 }
 0x3e1   : > { %1237 = vrcp.f32 %v527_v26 }
 0x3e3   : > { %v650_v42 = vpop.xlane.xlu0 %649 }
 0x3e4   : > { %1239 = vrcp.f32 %v650_v42 }
 0x3ea   : > { %v1236_v28 = vpop.eup %1235 }
 0x3eb   : > { %v1238_v35 = vpop.eup %1237 }
 0x3ee   : > { %v1240_v44 = vpop.eup %1239 }
 0x408   : > { %v773_v43 = vpop.xlane.xlu0 %772 }
 0x409   : > { %1241 = vrcp.f32 %v773_v43 }
 0x413   : > { %v1242_v53 = vpop.eup %1241 }
 0x421   : > { %v454_v29 = vpop.f32.mrb[4].mxu0 }
 0x422   : > { %v461_v30 = vmul.f32 %v1236_v28, %v454_v29  ;;  %v1087_v31 = vpop.f32.mrb[5].mxu0 }
 0x423   : > { %v457_v32 = vpop.f32.mrb[6].mxu0 }
 0x424   : > { %v462_v33 = vpack.c.bf16 %v461_v30, %v461_v30  ;;  %v1088_v34 = vpop.f32.mrb[7].mxu0 }
 0x426   : > { %464 = vst.msk [vmem:[#allocation3] sm:$0xf] %vm463_vm6, %v462_v33 }
 0x429   : > { %v571_v36 = vpop.f32.mrb[8].mxu0 }
 0x42a   : > { %v578_v37 = vmul.f32 %v1238_v35, %v571_v36  ;;  %v1099_v38 = vpop.f32.mrb[9].mxu0 }
 0x42b   : > { %v574_v39 = vpop.f32.mrb[10].mxu0 }
 0x42c   : > { %v1044_v40 = vpack.c.bf16 %v578_v37, %v578_v37  ;;  %v1100_v41 = vpop.f32.mrb[11].mxu0 }
 0x42e   : > { %583 = vrot.lane.b32.xlu0 %v1044_v40, %s1420_s17 }
 0x446   : > { %v694_v45 = vpop.f32.mrb[12].mxu0 }
 0x447   : > { %v701_v46 = vmul.f32 %v1240_v44, %v694_v45  ;;  %v1111_v47 = vpop.f32.mrb[13].mxu0 }
 0x448   : > { %v697_v49 = vpop.f32.mrb[14].mxu0 }
 0x449   : > { %v1045_v50 = vpack.c.bf16 %v701_v46, %v701_v46  ;;  %v1112_v51 = vpop.f32.mrb[15].mxu0 }
 0x44b   : > { %706 = vrot.lane.b32.xlu1 %v1045_v50, %s1421_s24 }
 0x44f   : > { %v817_v54 = vpop.f32.mrb[16].mxu0 }
 0x450   : > { %v824_v55 = vmul.f32 %v1242_v53, %v817_v54  ;;  %v1123_v56 = vpop.f32.mrb[17].mxu0 }
 0x451   : > { %v820_v57 = vpop.f32.mrb[18].mxu0 }
 0x452   : > { %v1046_v58 = vpack.c.bf16 %v824_v55, %v824_v55  ;;  %v1124_v59 = vpop.f32.mrb[19].mxu0 }
 0x454   : > { %829 = vrot.lane.b32.xlu1 %v1046_v58, %s1422_s26 }
 0x4a0   : > { %v584_v60 = vpop.permute.xlu0 %583 }
 0x4a1   : > { %587 = vst.msk [vmem:[#allocation3] sm:$0xf] %vm586_vm7, %v584_v60 }
 0x4bd   : > { %v707_v61 = vpop.permute.xlu1 %706 }
 0x4be   : > { %710 = vst.msk [vmem:[#allocation3] sm:$0xf] %vm709_vm8, %v707_v61 }
 0x4c6   : > { %v830_v0 = vpop.permute.xlu1 %829 }
 0x4c7   : > { %833 = vst.msk [vmem:[#allocation3] sm:$0xf] %vm832_vm9, %v830_v0 }
 0x4ce   : > { %v834_v62 = vld [vmem:[#allocation3] sm:$0xf] }
 0x4cf   : > { %1130 = vmatmul.mubr.msk.bf16.vlgmr.msra.gmra.mrb[16].mxu1 %vm295_vm1, %v834_v62 }
 0x5a2   : > { %v895_v1 = vpop.f32.mrb[16].mxu1 }
 0x5a3   : > { %v896_v2 = vadd.f32 %v1036_v63, %v895_v1  ;;  %v1131_v3 = vpop.f32.mrb[17].mxu1 }
 0x5a4   : > { %v898_v4 = vpop.f32.mrb[18].mxu1 }
 0x5a5   : > { %v1132_v5 = vpop.f32.mrb[19].mxu1  ;;  %901 = vst.msk [vmem:[%s268_s28] sm:$0xff] %vm295_vm1, %v896_v2 }
 0x5a6   : > { %1342 = shalt.err (!%p1339_p2)
}
 0x5a7   : > { %s1343_s12 = scalar_lea.hbm %s1726_s15, 128  ;;  %s1347_s26 = scalar_lea.hbm %s1776_s5, 256 }
 0x5a8   : > { %p1344_p13 = scmp.ne.s32.totalorder %s1726_s15, %s1343_s12  ;;  %p1348_p4 = scmp.lt.u32.totalorder %s1726_s15, %s1776_s5 }
 0x5a9   : > { %p1349_p5 = scmp.lt.u32.totalorder %s1347_s26, %s1343_s12  ;;  %p1351_p11 = scmp.lt.u32.totalorder %s1343_s12, %s1726_s15 }
 0x5aa   : > { %p1345_p6 = pnand %p1344_p13, %p1790_p0 }
 0x5ab   : > { %p1350_p8 = por %p1349_p5, %p1348_p4 }
 0x5ac   : > { %p1346_p10 = pneg %p1345_p6 }
 0x5ad   : > { %p1352_p1 = por %p1351_p11, %p1350_p8 }
 0x5af   : > { %p1353_p3 = pnand %p1352_p1, %p1346_p10 }
 0x5b1   : > { %1356 = shalt.err (!%p1353_p3)
}
 0x5b2   : > { %1143 = dma.vmem_to_hbm [thread:$0]  (%p1790_p0), %s1728_s7, 128, %s1726_s15, %s903_s22  }
 0x5b3 PF: > { %s928_s11 = sand.u32 1, %s1387_s18   ;;  %p1791_p7 = scmp.ne.s32.totalorder %s1781_s25, 0 }
 0x5b4   : > { %p1792_p9 = scmp.ge.s32.totalorder %s1399_s21, 2  ;;  %s929_s28 = scalar_lea.sflag [#allocation6], %s928_s11 }
 0x5b6   : > { %p1157_p12 = pnand %p1792_p9, %p1791_p7 }
 0x5b8   : > { %1382 = dma.done.wait (!%p1157_p12), %s929_s28, 128  }
 0x5b9   : > { %1384 = vsyncadd (!%p1157_p12), %s929_s28, 4294967168  ;;  %p19_p2 = scmp.ge.s32.totalorder %s1564_s14, 4   ;;  %s1793_s18 = smov %s1391_s19 }
 0x5ba   : > { %s1794_s19 = smov %s1395_s20  ;;  %s1795_s20 = smov %s1580_s27 }
 0x5bb   : > { %s1796_s21 = smov %s1564_s14  ;;  %21 = sbr.rel (!%p19_p2) target bundleno = 6 (0x6), region = 93 }
 0x5c2   :  { %934 = vsyncpa [#allocation5], 1 }
 0x5c3   :  { %936 = vsyncpa [#allocation5 + $0x1], 1 }
 0x5c4   :  { %937 = vsyncpa [#allocation8], 1 }
 0x5c5   :  { %938 = vsyncpa [#allocation6], 1 }
 0x5c6   :  { %940 = vsyncpa [#allocation6 + $0x1], 1 }

</bundles_post_ra>
